<compile_context>
chip_gen: v5e
topology: v5e:2x2
jax: 0.10.0
libtpu: 0.0.40
codegen_flags: <defaults>
</compile_context>

<pallas_src>
import jax
import jax.numpy as jnp
from jax import lax
from jax.experimental import pallas as pl
from jax.experimental.pallas import tpu as pltpu


# ----------------------------------------------------------------------------
# Fused kernel: conv3x3 as one im2col matmul + bias + ReLU + global avg pool
# (matmul against a precomputed block-averaging matrix) + heads Linear.
# ----------------------------------------------------------------------------
def multihead_fused_kernel(p_ref, w36_ref, cb_ref, pool_ref, hw_ref, hb_ref,
                           out_ref):
    # p_ref   : [K, TN]   bf16 im2col patches for this batch tile (TN = TB*HW)
    # w36_ref : [F, K]    bf16 conv weight, row-major (kh, kw, c) columns
    # cb_ref  : [F, 1]    f32  conv bias
    # pool_ref: [TB, TN]  f32  block-averaging matrix (1/HW on each sample's cols)
    # hw_ref  : [F, O]    f32  heads_classifier weight ([in, out])
    # hb_ref  : [1, O]    f32  heads_classifier bias
    # out_ref : [TB, O]   f32  fused output tile

    # Conv as a single MXU push, lane-dense (F, TN) result, f32 accumulation.
    conv = jnp.dot(w36_ref[...], p_ref[...],
                   preferred_element_type=jnp.float32)          # [F, TN]
    conv = jnp.maximum(conv + cb_ref[...], 0.0)                  # bias + ReLU

    # Global average pool: contract the lane axis against the precomputed
    # averaging matrix (q @ k^T pattern, no transposes / lane reshapes).
    feats = lax.dot_general(pool_ref[...], conv,
                            dimension_numbers=(((1,), (1,)), ((), ())),
                            preferred_element_type=jnp.float32)  # [TB, F]

    # heads_classifier: plain [TB, F] x [F, O] matmul.
    out = jnp.dot(feats, hw_ref[...],
                  preferred_element_type=jnp.float32) + hb_ref[...]
    out_ref[...] = out.astype(out_ref.dtype)


def _pick_batch_tile(B):
    # Prefer >=2 grid steps (pipelining, v7x dual-core sharding) with a
    # sublane-aligned tile; fall back to the whole batch (full-dim block is
    # always a legal BlockSpec).
    for tb in (128, 64, 32, 16, 8):
        if B % tb == 0 and B // tb >= 2:
            return tb
    return B


# ----------------------------------------------------------------------------
# Wrapper (jit this): im2col / pooling-matrix / re-layout glue + one fused
# pallas_call.  All of the glue fuses into the jitted executable's prologue.
# ----------------------------------------------------------------------------
def multihead_forward(x_nchw, conv_w_hwio, conv_b, head_w_io, head_b):
    """MultiHeadModel.forward: x [B, Cin, H, W] -> outputs [B, out_dim*heads]."""
    B, Cin, H, W = x_nchw.shape
    KH, KW, Cin_w, F = conv_w_hwio.shape
    assert Cin_w == Cin
    D, O = head_w_io.shape
    assert D == F
    K = KH * KW * Cin
    HW = H * W

    TB = _pick_batch_tile(B)
    TN = TB * HW        # lane extent per grid step (multiple of 128 here)
    N = B * HW

    # NCHW -> NHWC (channels last) and pad=1 for the 3x3 "same" conv.
    xp = jnp.pad(jnp.transpose(x_nchw, (0, 2, 3, 1)),
                 ((0, 0), (1, 1), (1, 1), (0, 0)))               # [B, H+2, W+2, Cin]

    # Wrapper-side im2col: column n = b*HW + h*W + w, row k = (kh*KW + kw)*Cin + c.
    pieces = [xp[:, kh:kh + H, kw:kw + W, :].reshape(N, Cin)
              for kh in range(KH) for kw in range(KW)]           # each [N, Cin]
    patches = jnp.concatenate(pieces, axis=-1).T                 # [K, N]
    patches = patches.astype(jnp.bfloat16)                       # MXU fast path

    w36 = conv_w_hwio.reshape(K, F).T.astype(jnp.bfloat16)       # [F, K]
    cb = conv_b.reshape(F, 1).astype(jnp.float32)
    hw = head_w_io.astype(jnp.float32)
    hb = head_b.reshape(1, O).astype(jnp.float32)

    # Compile-time-constant block-averaging matrix (same for every grid step).
    pool = (jnp.arange(TN, dtype=jnp.int32)[None, :] // HW
            == jnp.arange(TB, dtype=jnp.int32)[:, None]
            ).astype(jnp.float32) * (1.0 / HW)                   # [TB, TN]

    return pl.pallas_call(
        multihead_fused_kernel,
        out_shape=jax.ShapeDtypeStruct((B, O), jnp.float32),
        grid=(B // TB,),
        in_specs=[
            pl.BlockSpec((K, TN), lambda b: (0, b)),             # patches (blocked on N)
            pl.BlockSpec((F, K), lambda b: (0, 0)),              # conv weight (resident)
            pl.BlockSpec((F, 1), lambda b: (0, 0)),              # conv bias
            pl.BlockSpec((TB, TN), lambda b: (0, 0)),            # pooling matrix
            pl.BlockSpec((D, O), lambda b: (0, 0)),              # heads weight
            pl.BlockSpec((1, O), lambda b: (0, 0)),              # heads bias
        ],
        out_specs=pl.BlockSpec((TB, O), lambda b: (b, 0)),
        compiler_params=pltpu.CompilerParams(
            dimension_semantics=("parallel",),
            vmem_limit_bytes=64 * 1024 * 1024),
    )(patches, w36, cb, pool, hw, hb)


# ----------------------------------------------------------------------------
# Pure-JAX reference of the same forward pass (for a numerical check).
# ----------------------------------------------------------------------------
def reference_forward(x_nchw, conv_w_hwio, conv_b, head_w_io, head_b):
    KH, KW, Cin, F = conv_w_hwio.shape
    xp = jnp.pad(jnp.transpose(x_nchw, (0, 2, 3, 1)),
                 ((0, 0), (1, 1), (1, 1), (0, 0)))
    B, Hp, Wp, _ = xp.shape
    H, W = Hp - KH + 1, Wp - KW + 1
    acc = jnp.zeros((B, H, W, F), jnp.float32)
    for kh in range(KH):
        for kw in range(KW):
            acc = acc + jnp.einsum(
                "bhwc,cf->bhwf", xp[:, kh:kh + H, kw:kw + W, :],
                conv_w_hwio[kh, kw], precision=lax.Precision.HIGHEST)
    acc = jnp.maximum(acc + conv_b, 0.0)
    feats = acc.mean(axis=(1, 2))                                # [B, F]
    return jnp.dot(feats, head_w_io,
                   precision=lax.Precision.HIGHEST) + head_b


if __name__ == "__main__":
    B, Cin, H, W = 16, 4, 16, 16      # B=16 -> TB=8, 2 pipelined grid steps
    F = 8                             # featurizer output dim (= classifier.in_features)
    NUM_CLASSES = 3                   # classifier.out_features
    HEADS = 2
    OUT = NUM_CLASSES * HEADS         # heads_classifier.out_features

    key = jax.random.PRNGKey(0)
    kx, kcw, kcb, khw, khb = jax.random.split(key, 5)

    x = jax.random.normal(kx, (B, Cin, H, W), dtype=jnp.float32)
    conv_w = jax.random.normal(kcw, (3, 3, Cin, F), dtype=jnp.float32) * 0.1   # HWIO
    conv_b = jax.random.normal(kcb, (F,), dtype=jnp.float32) * 0.1
    head_w = jax.random.normal(khw, (F, OUT), dtype=jnp.float32) * 0.1         # [in, out]
    head_b = jax.random.normal(khb, (OUT,), dtype=jnp.float32) * 0.1

    fwd = jax.jit(multihead_forward)
    out = jax.block_until_ready(fwd(x, conv_w, conv_b, head_w, head_b))
    assert out.shape == (B, OUT), out.shape

    # Numerical check against the pure-JAX reference (bf16 MXU operands ->
    # expect ~1e-3 abs error at these scales).
    ref = reference_forward(x, conv_w, conv_b, head_w, head_b)
    max_err = float(jnp.max(jnp.abs(out - ref)))
    assert jnp.allclose(out, ref, rtol=1e-2, atol=1e-2), f"max_err={max_err}"

    # process_batch-style per-head chunking (matches torch.chunk(pred, heads, -1)).
    y_pred_heads = jnp.split(out, HEADS, axis=-1)
    assert all(p.shape == (B, NUM_CLASSES) for p in y_pred_heads)

    print("KERNEL_OK")
</pallas_src>

<mosaic_0001>
module attributes {stable_mosaic.version = 11 : i64} {
  func.func @multihead_fused_kernel(%arg0: i32, %arg1: memref<36x2048xbf16, #tpu.memory_space<vmem>>, %arg2: memref<8x36xbf16, #tpu.memory_space<vmem>>, %arg3: memref<8x1xf32, #tpu.memory_space<vmem>>, %arg4: memref<8x2048xf32, #tpu.memory_space<vmem>>, %arg5: memref<8x6xf32, #tpu.memory_space<vmem>>, %arg6: memref<1x6xf32, #tpu.memory_space<vmem>>, %arg7: memref<8x6xf32, #tpu.memory_space<vmem>>) attributes {dimension_semantics = [#tpu.dimension_semantics<parallel>], iteration_bounds = array<i64: 2>, scalar_prefetch = 0 : i64, scratch_operands = 0 : i64, tpu.core_type = #tpu.core_type<tc>, window_params = [{transform_indices = @transform_0, window_bounds = array<i64: 36, 2048>}, {pipeline_mode = #tpu.pipeline_mode<synchronous>, transform_indices = @transform_1, window_bounds = array<i64: 8, 36>}, {pipeline_mode = #tpu.pipeline_mode<synchronous>, transform_indices = @transform_2, window_bounds = array<i64: 8, 1>}, {pipeline_mode = #tpu.pipeline_mode<synchronous>, transform_indices = @transform_3, window_bounds = array<i64: 8, 2048>}, {pipeline_mode = #tpu.pipeline_mode<synchronous>, transform_indices = @transform_4, window_bounds = array<i64: 8, 6>}, {pipeline_mode = #tpu.pipeline_mode<synchronous>, transform_indices = @transform_5, window_bounds = array<i64: 1, 6>}, {transform_indices = @transform_6, window_bounds = array<i64: 8, 6>}]} {
    %c0 = arith.constant 0 : index
    %c0_0 = arith.constant 0 : index
    %0 = vector.load %arg2[%c0, %c0_0] : memref<8x36xbf16, #tpu.memory_space<vmem>>, vector<8x36xbf16>
    %c0_1 = arith.constant 0 : index
    %c0_2 = arith.constant 0 : index
    %1 = vector.load %arg1[%c0_1, %c0_2] : memref<36x2048xbf16, #tpu.memory_space<vmem>>, vector<36x2048xbf16>
    %cst = arith.constant dense<0.000000e+00> : vector<8x2048xf32>
    %2 = tpu.matmul %0, %1, %cst {dimension_numbers = #tpu.dot_dimension_numbers<[1], [0], [0], [1], [0, 0, 1, 1], [], []>} : vector<8x36xbf16>, vector<36x2048xbf16>, vector<8x2048xf32> -> vector<8x2048xf32>
    %c0_3 = arith.constant 0 : index
    %c0_4 = arith.constant 0 : index
    %3 = vector.load %arg3[%c0_3, %c0_4] : memref<8x1xf32, #tpu.memory_space<vmem>>, vector<8x1xf32>
    %4 = vector.broadcast %3 : vector<8x1xf32> to vector<8x2048xf32>
    %5 = arith.addf %2, %4 : vector<8x2048xf32>
    %cst_5 = arith.constant 0.000000e+00 : f32
    %6 = vector.broadcast %cst_5 : f32 to vector<8x2048xf32>
    %7 = arith.maximumf %5, %6 : vector<8x2048xf32>
    %c0_6 = arith.constant 0 : index
    %c0_7 = arith.constant 0 : index
    %8 = vector.load %arg4[%c0_6, %c0_7] : memref<8x2048xf32, #tpu.memory_space<vmem>>, vector<8x2048xf32>
    %cst_8 = arith.constant dense<0.000000e+00> : vector<8x8xf32>
    %9 = tpu.matmul %8, %7, %cst_8 {dimension_numbers = #tpu.dot_dimension_numbers<[1], [1], [0], [0], [0, 0, 1, 0], [], []>} : vector<8x2048xf32>, vector<8x2048xf32>, vector<8x8xf32> -> vector<8x8xf32>
    %c0_9 = arith.constant 0 : index
    %c0_10 = arith.constant 0 : index
    %10 = vector.load %arg5[%c0_9, %c0_10] : memref<8x6xf32, #tpu.memory_space<vmem>>, vector<8x6xf32>
    %cst_11 = arith.constant dense<0.000000e+00> : vector<8x6xf32>
    %11 = tpu.matmul %9, %10, %cst_11 {dimension_numbers = #tpu.dot_dimension_numbers<[1], [0], [0], [1], [0, 0, 1, 1], [], []>} : vector<8x8xf32>, vector<8x6xf32>, vector<8x6xf32> -> vector<8x6xf32>
    %c0_12 = arith.constant 0 : index
    %c0_13 = arith.constant 0 : index
    %12 = vector.load %arg6[%c0_12, %c0_13] : memref<1x6xf32, #tpu.memory_space<vmem>>, vector<1x6xf32>
    %13 = vector.broadcast %12 : vector<1x6xf32> to vector<8x6xf32>
    %14 = arith.addf %11, %13 : vector<8x6xf32>
    %c0_14 = arith.constant 0 : index
    %c0_15 = arith.constant 0 : index
    %15 = vector.load %arg7[%c0_14, %c0_15] : memref<8x6xf32, #tpu.memory_space<vmem>>, vector<8x6xf32>
    tpu.vector_store %arg7[%c0_14, %c0_15], %14 {strides = array<i32>} : memref<8x6xf32, #tpu.memory_space<vmem>>, vector<8x6xf32>,
    return
  }
  func.func @transform_0(%arg0: i32) -> (i32, i32) {
    %c0_i32 = arith.constant 0 : i32
    %c0_i32_0 = arith.constant 0 : i32
    return %c0_i32, %arg0 : i32, i32
  }
  func.func @transform_1(%arg0: i32) -> (i32, i32) {
    %c0_i32 = arith.constant 0 : i32
    %c0_i32_0 = arith.constant 0 : i32
    %c0_i32_1 = arith.constant 0 : i32
    return %c0_i32, %c0_i32_0 : i32, i32
  }
  func.func @transform_2(%arg0: i32) -> (i32, i32) {
    %c0_i32 = arith.constant 0 : i32
    %c0_i32_0 = arith.constant 0 : i32
    %c0_i32_1 = arith.constant 0 : i32
    return %c0_i32, %c0_i32_0 : i32, i32
  }
  func.func @transform_3(%arg0: i32) -> (i32, i32) {
    %c0_i32 = arith.constant 0 : i32
    %c0_i32_0 = arith.constant 0 : i32
    %c0_i32_1 = arith.constant 0 : i32
    return %c0_i32, %c0_i32_0 : i32, i32
  }
  func.func @transform_4(%arg0: i32) -> (i32, i32) {
    %c0_i32 = arith.constant 0 : i32
    %c0_i32_0 = arith.constant 0 : i32
    %c0_i32_1 = arith.constant 0 : i32
    return %c0_i32, %c0_i32_0 : i32, i32
  }
  func.func @transform_5(%arg0: i32) -> (i32, i32) {
    %c0_i32 = arith.constant 0 : i32
    %c0_i32_0 = arith.constant 0 : i32
    %c0_i32_1 = arith.constant 0 : i32
    return %c0_i32, %c0_i32_0 : i32, i32
  }
  func.func @transform_6(%arg0: i32) -> (i32, i32) {
    %c0_i32 = arith.constant 0 : i32
    %c0_i32_0 = arith.constant 0 : i32
    return %arg0, %c0_i32 : i32, i32
  }
}

</mosaic_0001>

<bundles_post_ra>
// kernel: multihead_forward.1
= control target key start
LH: loop header
LB: loop body
LE: loop exit
PB: predicated region body
PF: predicated region fallthrough
CT: control target
= control target key end

     0   :  { %s1577_s21 = smov 0   ;;  %s1579_s22 = smov 0   ;;  %s1917_s0 = inlined_call_operand.vmem [shape: bf16[36,4096], index: 0, kind: input, shape index: {}]   ;;  %s1918_s1 = inlined_call_operand.vmem [shape: bf16[8,36], index: 1, kind: input, shape index: {}]   ;;  %s1919_s2 = inlined_call_operand.vmem [shape: f32[8,1], index: 2, kind: input, shape index: {}]   ;;  %s1920_s3 = inlined_call_operand.vmem [shape: f32[8,2048], index: 3, kind: input, shape index: {}]   ;;  %s1921_s4 = inlined_call_operand.vmem [shape: f32[8,6], index: 4, kind: input, shape index: {}]   ;;  %s1922_s5 = inlined_call_operand.vmem [shape: f32[1,6], index: 5, kind: input, shape index: {}]   ;;  %s1923_s6 = inlined_call_operand.vmem [shape: f32[16,6], index: 6, kind: output, shape index: {}]  }
   0x1   :  { %s1581_s23 = smov 0  }
   0x2 LB: > { %s1300_s24 = sadd.s32 4294967295, %s1539_s23   ;;  %s1594_s25 = sadd.s32 1, %s1539_s23   ;;  %s1539_s23 = sphi %s1581_s23, %s1926_s23   ;;  %s1535_s22 = sphi %s1579_s22, %s1925_s22   ;;  %s1531_s21 = sphi %s1577_s21, %s1924_s21  }
   0x3   : > { %s20_s26 = ssub.s32 %s1539_s23, %s1594_s25  ;;  %s23_s27 = sadd.s32 1, %s1535_s22 }
   0x4   : > { %p21_p0 = scmp.eq.s32.totalorder %s20_s26, 0  ;;  %p30_p1 = scmp.ne.s32.totalorder %s1535_s22, %s1531_s21 }
   0x5   : > { %p31_p2 = scmp.eq.s32.totalorder %s1539_s23, 0  ;;  %p1303_p4 = scmp.ge.s32.totalorder %s1539_s23, 2 }
   0x6   : > { %s1603_s28 = scalar_select %p21_p0, %s1535_s22, %s23_s27  }
   0x7   : > { %p32_p3 = por %p31_p2, %p30_p1  ;;  %202 = sbr.rel (%p1303_p4) target bundleno = 56 (0x38), region = 36 }
   0xc   : > { %205 = sbr.rel (!%p32_p3) target bundleno = 56 (0x38), region = 40  ;;  %s207_s29 = sand.u32 (%p32_p3), 1, %s1535_s22  }
   0xd   : > { %s1455_s30 = sshll.u32 (%p32_p3), %s1539_s23, 6  ;;  %s1488_s7 = smul.u32 (%p32_p3), 320, %s207_s29 }
   0xe   : > { %s1611_s10 = scalar_lea.vmem (%p32_p3), %s1917_s0, %s1455_s30 }
   0xf   : > { %v225_v0 = vld [vmem:[%s1611_s10] sm:$0xff] (%p32_p3)  ;;  %v227_v1 = vld [vmem:[%s1611_s10 + $0x8] sm:$0xff] (%p32_p3)  ;;  %v229_v2 = vld [vmem:[%s1611_s10 + $0x10] sm:$0xff] (%p32_p3)  ;;  %s1616_s11 = scalar_lea.vmem (%p32_p3), [#allocation2], %s1488_s7 }
  0x10   : > { %226 = vst [vmem:[%s1616_s11] sm:$0xff] (%p32_p3), %v225_v0  ;;  %v231_v3 = vld [vmem:[%s1611_s10 + $0x18] sm:$0xff] (%p32_p3)  ;;  %v233_v4 = vld [vmem:[%s1611_s10 + $0x20] sm:$0xff] (%p32_p3)  ;;  %v235_v5 = vld [vmem:[%s1611_s10 + $0x28] sm:$0xff] (%p32_p3) }
  0x11   : > { %228 = vst [vmem:[%s1616_s11 + $0x8] sm:$0xff] %v227_v1  ;;  %v237_v6 = vld [vmem:[%s1611_s10 + $0x30] sm:$0xff]  ;;  %v239_v7 = vld [vmem:[%s1611_s10 + $0x38] sm:$0xff]  ;;  %v241_v8 = vld [vmem:[%s1611_s10 + $0x80] sm:$0xff] }
  0x12   : > { %230 = vst [vmem:[%s1616_s11 + $0x10] sm:$0xff] %v229_v2  ;;  %v243_v9 = vld [vmem:[%s1611_s10 + $0x88] sm:$0xff]  ;;  %v245_v10 = vld [vmem:[%s1611_s10 + $0x90] sm:$0xff]  ;;  %v247_v11 = vld [vmem:[%s1611_s10 + $0x98] sm:$0xff] }
  0x13   : > { %232 = vst [vmem:[%s1616_s11 + $0x18] sm:$0xff] %v231_v3  ;;  %v249_v12 = vld [vmem:[%s1611_s10 + $0xa0] sm:$0xff]  ;;  %v251_v13 = vld [vmem:[%s1611_s10 + $0xa8] sm:$0xff]  ;;  %v253_v14 = vld [vmem:[%s1611_s10 + $0xb0] sm:$0xff] }
  0x14   : > { %234 = vst [vmem:[%s1616_s11 + $0x20] sm:$0xff] %v233_v4  ;;  %v255_v15 = vld [vmem:[%s1611_s10 + $0xb8] sm:$0xff]  ;;  %v257_v16 = vld [vmem:[%s1611_s10 + $0x100] sm:$0xff]  ;;  %v259_v17 = vld [vmem:[%s1611_s10 + $0x108] sm:$0xff] }
  0x15   : > { %236 = vst [vmem:[%s1616_s11 + $0x28] sm:$0xff] %v235_v5  ;;  %v261_v18 = vld [vmem:[%s1611_s10 + $0x110] sm:$0xff]  ;;  %v263_v19 = vld [vmem:[%s1611_s10 + $0x118] sm:$0xff]  ;;  %v265_v20 = vld [vmem:[%s1611_s10 + $0x120] sm:$0xff] }
  0x16   : > { %238 = vst [vmem:[%s1616_s11 + $0x30] sm:$0xff] %v237_v6  ;;  %v267_v21 = vld [vmem:[%s1611_s10 + $0x128] sm:$0xff]  ;;  %v269_v22 = vld [vmem:[%s1611_s10 + $0x130] sm:$0xff]  ;;  %v271_v23 = vld [vmem:[%s1611_s10 + $0x138] sm:$0xff] }
  0x17   : > { %240 = vst [vmem:[%s1616_s11 + $0x38] sm:$0xff] %v239_v7  ;;  %v273_v24 = vld [vmem:[%s1611_s10 + $0x180] sm:$0xff]  ;;  %v275_v25 = vld [vmem:[%s1611_s10 + $0x188] sm:$0xff]  ;;  %v277_v26 = vld [vmem:[%s1611_s10 + $0x190] sm:$0xff] }
  0x18   : > { %242 = vst [vmem:[%s1616_s11 + $0x40] sm:$0xff] %v241_v8  ;;  %v279_v27 = vld [vmem:[%s1611_s10 + $0x198] sm:$0xff]  ;;  %v281_v28 = vld [vmem:[%s1611_s10 + $0x1a0] sm:$0xff]  ;;  %v283_v29 = vld [vmem:[%s1611_s10 + $0x1a8] sm:$0xff] }
  0x19   : > { %244 = vst [vmem:[%s1616_s11 + $0x48] sm:$0xff] %v243_v9  ;;  %v285_v30 = vld [vmem:[%s1611_s10 + $0x1b0] sm:$0xff]  ;;  %v287_v31 = vld [vmem:[%s1611_s10 + $0x1b8] sm:$0xff]  ;;  %v289_v32 = vld [vmem:[%s1611_s10 + $0x200] sm:$0xff] }
  0x1a   : > { %246 = vst [vmem:[%s1616_s11 + $0x50] sm:$0xff] %v245_v10  ;;  %v291_v33 = vld [vmem:[%s1611_s10 + $0x208] sm:$0xff]  ;;  %v293_v34 = vld [vmem:[%s1611_s10 + $0x210] sm:$0xff]  ;;  %v295_v35 = vld [vmem:[%s1611_s10 + $0x218] sm:$0xff] }
  0x1b   : > { %248 = vst [vmem:[%s1616_s11 + $0x58] sm:$0xff] %v247_v11  ;;  %v297_v36 = vld [vmem:[%s1611_s10 + $0x220] sm:$0xff]  ;;  %v299_v37 = vld [vmem:[%s1611_s10 + $0x228] sm:$0xff]  ;;  %v301_v38 = vld [vmem:[%s1611_s10 + $0x230] sm:$0xff] }
  0x1c   : > { %250 = vst [vmem:[%s1616_s11 + $0x60] sm:$0xff] %v249_v12  ;;  %v303_v39 = vld [vmem:[%s1611_s10 + $0x238] sm:$0xff] }
  0x1d   : > { %252 = vst [vmem:[%s1616_s11 + $0x68] sm:$0xff] %v251_v13 }
  0x1e   : > { %254 = vst [vmem:[%s1616_s11 + $0x70] sm:$0xff] %v253_v14 }
  0x1f   : > { %256 = vst [vmem:[%s1616_s11 + $0x78] sm:$0xff] %v255_v15 }
  0x20   : > { %258 = vst [vmem:[%s1616_s11 + $0x80] sm:$0xff] %v257_v16 }
  0x21   : > { %260 = vst [vmem:[%s1616_s11 + $0x88] sm:$0xff] %v259_v17 }
  0x22   : > { %262 = vst [vmem:[%s1616_s11 + $0x90] sm:$0xff] %v261_v18 }
  0x23   : > { %264 = vst [vmem:[%s1616_s11 + $0x98] sm:$0xff] %v263_v19 }
  0x24   : > { %266 = vst [vmem:[%s1616_s11 + $0xa0] sm:$0xff] %v265_v20 }
  0x25   : > { %268 = vst [vmem:[%s1616_s11 + $0xa8] sm:$0xff] %v267_v21 }
  0x26   : > { %270 = vst [vmem:[%s1616_s11 + $0xb0] sm:$0xff] %v269_v22 }
  0x27   : > { %272 = vst [vmem:[%s1616_s11 + $0xb8] sm:$0xff] %v271_v23 }
  0x28   : > { %274 = vst [vmem:[%s1616_s11 + $0xc0] sm:$0xff] %v273_v24 }
  0x29   : > { %276 = vst [vmem:[%s1616_s11 + $0xc8] sm:$0xff] %v275_v25 }
  0x2a   : > { %278 = vst [vmem:[%s1616_s11 + $0xd0] sm:$0xff] %v277_v26 }
  0x2b   : > { %280 = vst [vmem:[%s1616_s11 + $0xd8] sm:$0xff] %v279_v27 }
  0x2c   : > { %282 = vst [vmem:[%s1616_s11 + $0xe0] sm:$0xff] %v281_v28 }
  0x2d   : > { %284 = vst [vmem:[%s1616_s11 + $0xe8] sm:$0xff] %v283_v29 }
  0x2e   : > { %286 = vst [vmem:[%s1616_s11 + $0xf0] sm:$0xff] %v285_v30 }
  0x2f   : > { %288 = vst [vmem:[%s1616_s11 + $0xf8] sm:$0xff] %v287_v31 }
  0x30   : > { %290 = vst [vmem:[%s1616_s11 + $0x100] sm:$0xff] %v289_v32 }
  0x31   : > { %292 = vst [vmem:[%s1616_s11 + $0x108] sm:$0xff] %v291_v33 }
  0x32   : > { %294 = vst [vmem:[%s1616_s11 + $0x110] sm:$0xff] %v293_v34 }
  0x33   : > { %296 = vst [vmem:[%s1616_s11 + $0x118] sm:$0xff] %v295_v35 }
  0x34   : > { %298 = vst [vmem:[%s1616_s11 + $0x120] sm:$0xff] %v297_v36 }
  0x35   : > { %300 = vst [vmem:[%s1616_s11 + $0x128] sm:$0xff] %v299_v37 }
  0x36   : > { %302 = vst [vmem:[%s1616_s11 + $0x130] sm:$0xff] %v301_v38 }
  0x37   : > { %304 = vst [vmem:[%s1616_s11 + $0x138] sm:$0xff] %v303_v39 }
  0x38 PF: > { %p1306_p5 = scmp.ge.s32.totalorder %s1539_s23, 1  ;;  %p309_p6 = scmp.lt.s32.totalorder %s1539_s23, 3 }
  0x3a   : > { %p310_p7 = pnand %p1306_p5, %p309_p6 }
  0x3b   : > { %s316_s12 = sand.u32 (!%p310_p7), 1, %s1531_s21   ;;  %p345_p8 = scmp.lt.s32.totalorder (!%p310_p7), %s1300_s24, 1 }
  0x3c   : > { %313 = sbr.rel (%p310_p7) target bundleno = 536 (0x218), region = 63 }
  0x3d   : > { %s1489_s13 = smul.u32 (!%p310_p7), 320, %s316_s12 }
  0x3f   : > { %s1698_s14 = scalar_lea.vmem (!%p310_p7), [#allocation2], %s1489_s13 }
  0x41   : > { %v1541_v40 = vmov 0   ;;  %v383_v41 = vld [vmem:[%s1698_s14 + $0x100] sm:$0x33]  ;;  %v384_v42 = vld [vmem:[%s1698_s14 + $0x108] sm:$0x33]  ;;  %vm601_vm0 = vcmask 1041408  }
  0x42   : > { %1515 = vset.pattern.permute.xlu0 %v1541_v40  ;;  %v501_v43 = vunpack.c.l.b16 %v383_v41  ;;  %v502_v44 = vunpack.c.h.b16 %v383_v41  ;;  %v503_v45 = vunpack.c.l.b16 %v384_v42  ;;  %v504_v46 = vunpack.c.h.b16 %v384_v42  ;;  %v1374_v47 = vld [vmem:[%s1698_s14 + $0x80] sm:$0xf]  ;;  %v1472_v53 = vld [vmem:[%s1698_s14 + $0x84] sm:$0xf]  ;;  %v1382_v55 = vld [vmem:[%s1698_s14 + $0x88] sm:$0xf] }
  0x43   : > { %v1480_v48 = vld [vmem:[%s1698_s14 + $0xbc] sm:$0xf0]  ;;  %v1376_v54 = vld [vmem:[%s1698_s14 + $0xc0] sm:$0xf0]  ;;  %v1481_v56 = vld [vmem:[%s1698_s14 + $0xc4] sm:$0xf0] }
  0x44   : > { %v549_v49 = vpack.c.b16 %v501_v43, %v501_v43  ;;  %v550_v50 = vpack.c.b16 %v502_v44, %v502_v44  ;;  %v551_v51 = vpack.c.b16 %v503_v45, %v503_v45  ;;  %v552_v52 = vpack.c.b16 %v504_v46, %v504_v46  ;;  %v1473_v57 = vld [vmem:[%s1698_s14 + $0x8c] sm:$0xf]  ;;  %v1310_v63 = vld [vmem:[%s1698_s14] sm:$0xf]  ;;  %v1456_v3 = vld [vmem:[%s1698_s14 + $0x4] sm:$0xf] }
  0x45   : > { %v1384_v58 = vld [vmem:[%s1698_s14 + $0xc8] sm:$0xf0]  ;;  %v1375_v0 = vor.u32 %v1480_v48, %v1374_v47  ;;  %v1379_v1 = vor.u32 %v1472_v53, %v1376_v54  ;;  %v1464_v2 = vld [vmem:[%s1698_s14 + $0x3c] sm:$0xf0]  ;;  %v385_v4 = vld [vmem:[%s1698_s14 + $0x110] sm:$0x33]  ;;  %v1383_v5 = vor.u32 %v1481_v56, %v1382_v55 }
  0x46   : > { %v603_v59 = vsel %vm601_vm0, %v549_v49, 0  ;;  %v606_v60 = vsel %vm601_vm0, %v550_v50, 0  ;;  %v609_v61 = vsel %vm601_vm0, %v551_v51, 0  ;;  %v612_v62 = vsel %vm601_vm0, %v552_v52, 0  ;;  %v1312_v7 = vld [vmem:[%s1698_s14 + $0x40] sm:$0xf0] }
  0x47   : > { %655 = vmatpush.bf16.msra.mxu0 %v603_v59  ;;  %668 = vmatpush.bf16.msra.mxu1 %v606_v60  ;;  %v1387_v6 = vor.u32 %v1473_v57, %v1384_v58  ;;  %v1318_v8 = vld [vmem:[%s1698_s14 + $0x8] sm:$0xf]  ;;  %v505_v9 = vunpack.c.l.b16 %v385_v4  ;;  %v506_v10 = vunpack.c.h.b16 %v385_v4  ;;  %v386_v11 = vld [vmem:[%s1698_s14 + $0x118] sm:$0x33]  ;;  %v1457_v13 = vld [vmem:[%s1698_s14 + $0xc] sm:$0xf]  ;;  %v1311_v19 = vor.u32 %v1464_v2, %v1310_v63 }
  0x48   : > { %681 = vmatpush.bf16.msra.mxu2 %v609_v61  ;;  %694 = vmatpush.bf16.msra.mxu3 %v612_v62  ;;  %v1465_v12 = vld [vmem:[%s1698_s14 + $0x44] sm:$0xf0]  ;;  %v1320_v14 = vld [vmem:[%s1698_s14 + $0x48] sm:$0xf0]  ;;  %v507_v15 = vunpack.c.l.b16 %v386_v11  ;;  %v508_v16 = vunpack.c.h.b16 %v386_v11  ;;  %v1315_v20 = vor.u32 %v1456_v3, %v1312_v7  ;;  %v1390_v25 = vld [vmem:[%s1698_s14 + $0x90] sm:$0xf] }
  0x49   : > { %v553_v17 = vpack.c.b16 %v505_v9, %v505_v9  ;;  %v554_v18 = vpack.c.b16 %v506_v10, %v506_v10  ;;  %v1319_v21 = vor.u32 %v1465_v12, %v1318_v8  ;;  %v1323_v22 = vor.u32 %v1457_v13, %v1320_v14  ;;  %v1482_v26 = vld [vmem:[%s1698_s14 + $0xcc] sm:$0xf0]  ;;  %v1474_v27 = vld [vmem:[%s1698_s14 + $0x94] sm:$0xf]  ;;  %v387_v31 = vld [vmem:[%s1698_s14 + $0x120] sm:$0x33] }
  0x4a   : > { %v555_v23 = vpack.c.b16 %v507_v15, %v507_v15  ;;  %v556_v24 = vpack.c.b16 %v508_v16, %v508_v16  ;;  %v1392_v30 = vld [vmem:[%s1698_s14 + $0xd0] sm:$0xf0]  ;;  %v1734_v32 = vld [vmem:[%s1918_s1] sm:$0xf]  ;;  %vm597_vm1 = vcmask 293888   ;;  %v509_v33 = vunpack.c.l.b16 %v387_v31  ;;  %s1928_s24 = smov (!%p345_p8, %s1300_s24), 1 }
  0x4b   : > { %656 = vmatpush.bf16.msra.mxu0 %v1375_v0  ;;  %669 = vmatpush.bf16.msra.mxu1 %v1379_v1  ;;  %v615_v28 = vsel %vm601_vm0, %v553_v17, 0  ;;  %v618_v29 = vsel %vm601_vm0, %v554_v18, 0  ;;  %v510_v34 = vunpack.c.h.b16 %v387_v31  ;;  %v388_v35 = vld [vmem:[%s1698_s14 + $0x128] sm:$0x33]  ;;  %v1398_v36 = vld [vmem:[%s1698_s14 + $0x98] sm:$0xf]  ;;  %v1391_v41 = vor.u32 %v1482_v26, %v1390_v25 }
  0x4c   : > { %682 = vmatpush.bf16.msra.mxu2 %v1383_v5  ;;  %695 = vmatpush.bf16.msra.mxu3 %v1387_v6  ;;  %v1483_v37 = vld [vmem:[%s1698_s14 + $0xd4] sm:$0xf0]  ;;  %v1475_v38 = vld [vmem:[%s1698_s14 + $0x9c] sm:$0xf]  ;;  %v621_v39 = vsel %vm601_vm0, %v555_v23, 0  ;;  %v624_v40 = vsel %vm601_vm0, %v556_v24, 0  ;;  %v1395_v42 = vor.u32 %v1474_v27, %v1392_v30  ;;  %v511_v48 = vunpack.c.l.b16 %v388_v35 }
  0x4d   : > { %v1400_v43 = vld [vmem:[%s1698_s14 + $0xd8] sm:$0xf0]  ;;  %v1326_v44 = vld [vmem:[%s1698_s14 + $0x10] sm:$0xf]  ;;  %v1458_v46 = vld [vmem:[%s1698_s14 + $0x14] sm:$0xf]  ;;  %v512_v49 = vunpack.c.h.b16 %v388_v35  ;;  %v557_v51 = vpack.c.b16 %v509_v33, %v509_v33  ;;  %v558_v52 = vpack.c.b16 %v510_v34, %v510_v34  ;;  %v1399_v53 = vor.u32 %v1483_v37, %v1398_v36 }
  0x4e   : > { %v1466_v45 = vld [vmem:[%s1698_s14 + $0x4c] sm:$0xf0]  ;;  %v1328_v47 = vld [vmem:[%s1698_s14 + $0x50] sm:$0xf0]  ;;  %v391_v50 = vld [vmem:[%s1919_s2] sm:$0xff]  ;;  %v1403_v54 = vor.u32 %v1475_v38, %v1400_v43  ;;  %v559_v61 = vpack.c.b16 %v511_v48, %v511_v48  ;;  %vm1215_vm2 = vcmask 64512  }
  0x4f   : > { %657 = vmatpush.bf16.msra.mxu0 %v1311_v19  ;;  %670 = vmatpush.bf16.msra.mxu1 %v1315_v20  ;;  %v1334_v55 = vld [vmem:[%s1698_s14 + $0x18] sm:$0xf]  ;;  %v1327_v56 = vor.u32 %v1466_v45, %v1326_v44  ;;  %v1331_v57 = vor.u32 %v1458_v46, %v1328_v47  ;;  %v1459_v59 = vld [vmem:[%s1698_s14 + $0x1c] sm:$0xf]  ;;  %v560_v62 = vpack.c.b16 %v512_v49, %v512_v49  ;;  %v1406_v63 = vld [vmem:[%s1698_s14 + $0xa0] sm:$0xf] }
  0x50   : > { %683 = vmatpush.bf16.msra.mxu2 %v1319_v21  ;;  %696 = vmatpush.bf16.msra.mxu3 %v1323_v22  ;;  %v1467_v58 = vld [vmem:[%s1698_s14 + $0x54] sm:$0xf0]  ;;  %v1336_v60 = vld [vmem:[%s1698_s14 + $0x58] sm:$0xf0]  ;;  %v1484_v0 = vld [vmem:[%s1698_s14 + $0xdc] sm:$0xf0] }
  0x51   : > { %394 = vperm.xlu0 %1515, %v391_v50   ;;  %v627_v1 = vsel %vm601_vm0, %v557_v51, 0  ;;  %v630_v2 = vsel %vm601_vm0, %v558_v52, 0  ;;  %v1476_v3 = vld [vmem:[%s1698_s14 + $0xa4] sm:$0xf]  ;;  %v1335_v5 = vor.u32 %v1467_v58, %v1334_v55  ;;  %v1339_v6 = vor.u32 %v1459_v59, %v1336_v60  ;;  %v389_v7 = vld [vmem:[%s1698_s14 + $0x130] sm:$0x33] }
  0x52   : > { %1436 = vmatmul.msk.bf16.vlgmr.msra.gmra.mxu0 %vm597_vm1, %v1734_v32  ;;  %1437 = vmatmul.msk.bf16.vlgmr.msra.gmra.mxu1 %vm597_vm1, %v1734_v32  ;;  %v1408_v4 = vld [vmem:[%s1698_s14 + $0xe0] sm:$0xf0]  ;;  %v1414_v8 = vld [vmem:[%s1698_s14 + $0xa8] sm:$0xf]  ;;  %v390_v10 = vld [vmem:[%s1698_s14 + $0x138] sm:$0x33]  ;;  %v1407_v13 = vor.u32 %v1484_v0, %v1406_v63  ;;  %v513_v17 = vunpack.c.l.b16 %v389_v7  ;;  %v514_v18 = vunpack.c.h.b16 %v389_v7 }
  0x53   : > { %707 = vmatpush.bf16.msrb.mxu0 %v615_v28  ;;  %720 = vmatpush.bf16.msrb.mxu1 %v618_v29  ;;  %v1485_v9 = vld [vmem:[%s1698_s14 + $0xe4] sm:$0xf0]  ;;  %v633_v11 = vsel %vm601_vm0, %v559_v61, 0  ;;  %v636_v12 = vsel %vm601_vm0, %v560_v62, 0  ;;  %v1411_v14 = vor.u32 %v1476_v3, %v1408_v4  ;;  %v1477_v15 = vld [vmem:[%s1698_s14 + $0xac] sm:$0xf]  ;;  %v515_v21 = vunpack.c.l.b16 %v390_v10 }
  0x54   : > { %1438 = vmatmul.msk.bf16.vlgmr.msra.gmra.mxu2 %vm597_vm1, %v1734_v32  ;;  %1439 = vmatmul.msk.bf16.vlgmr.msra.gmra.mxu3 %vm597_vm1, %v1734_v32  ;;  %v1416_v16 = vld [vmem:[%s1698_s14 + $0xe8] sm:$0xf0]  ;;  %v1342_v19 = vld [vmem:[%s1698_s14 + $0x20] sm:$0xf]  ;;  %v516_v22 = vunpack.c.h.b16 %v390_v10  ;;  %v1415_v23 = vor.u32 %v1485_v9, %v1414_v8  ;;  %v1460_v25 = vld [vmem:[%s1698_s14 + $0x24] sm:$0xf]  ;;  %v561_v31 = vpack.c.b16 %v513_v17, %v513_v17  ;;  %v562_v33 = vpack.c.b16 %v514_v18, %v514_v18 }
  0x55   : > { %733 = vmatpush.bf16.msrb.mxu2 %v621_v39  ;;  %746 = vmatpush.bf16.msrb.mxu3 %v624_v40  ;;  %v1468_v20 = vld [vmem:[%s1698_s14 + $0x5c] sm:$0xf0]  ;;  %v1419_v24 = vor.u32 %v1477_v15, %v1416_v16  ;;  %v1344_v26 = vld [vmem:[%s1698_s14 + $0x60] sm:$0xf0]  ;;  %v1350_v27 = vld [vmem:[%s1698_s14 + $0x28] sm:$0xf]  ;;  %v563_v36 = vpack.c.b16 %v515_v21, %v515_v21 }
  0x56   : > { %v1469_v28 = vld [vmem:[%s1698_s14 + $0x64] sm:$0xf0]  ;;  %v1461_v29 = vld [vmem:[%s1698_s14 + $0x2c] sm:$0xf]  ;;  %v1343_v34 = vor.u32 %v1468_v20, %v1342_v19  ;;  %v1347_v35 = vor.u32 %v1460_v25, %v1344_v26  ;;  %v564_v37 = vpack.c.b16 %v516_v22, %v516_v22  ;;  %v1422_v40 = vld [vmem:[%s1698_s14 + $0xb0] sm:$0xf] }
  0x57   : > { %708 = vmatpush.bf16.msrb.mxu0 %v1391_v41  ;;  %721 = vmatpush.bf16.msrb.mxu1 %v1395_v42  ;;  %v1352_v30 = vld [vmem:[%s1698_s14 + $0x68] sm:$0xf0]  ;;  %v1351_v38 = vor.u32 %v1469_v28, %v1350_v27  ;;  %v1486_v41 = vld [vmem:[%s1698_s14 + $0xec] sm:$0xf0]  ;;  %v1478_v42 = vld [vmem:[%s1698_s14 + $0xb4] sm:$0xf] }
  0x58   : > { %v1355_v39 = vor.u32 %v1461_v29, %v1352_v30  ;;  %v1424_v43 = vld [vmem:[%s1698_s14 + $0xf0] sm:$0xf0]  ;;  %v639_v44 = vsel %vm601_vm0, %v561_v31, 0  ;;  %v642_v45 = vsel %vm601_vm0, %v562_v33, 0  ;;  %v1430_v46 = vld [vmem:[%s1698_s14 + $0xb8] sm:$0xf]  ;;  %v1423_v52 = vor.u32 %v1486_v41, %v1422_v40 }
  0x59   : > { %734 = vmatpush.bf16.msrb.mxu2 %v1399_v53  ;;  %747 = vmatpush.bf16.msrb.mxu3 %v1403_v54  ;;  %v1487_v47 = vld [vmem:[%s1698_s14 + $0xf4] sm:$0xf0]  ;;  %v645_v48 = vsel %vm601_vm0, %v563_v36, 0  ;;  %v648_v49 = vsel %vm601_vm0, %v564_v37, 0  ;;  %v1479_v50 = vld [vmem:[%s1698_s14 + $0xbc] sm:$0xf]  ;;  %v1427_v53 = vor.u32 %v1478_v42, %v1424_v43 }
  0x5a   : > { %v1432_v51 = vld [vmem:[%s1698_s14 + $0xf8] sm:$0xf0]  ;;  %v1358_v54 = vld [vmem:[%s1698_s14 + $0x30] sm:$0xf]  ;;  %v1462_v58 = vld [vmem:[%s1698_s14 + $0x34] sm:$0xf] }
  0x5b   : > { %709 = vmatpush.bf16.msrb.mxu0 %v1327_v56  ;;  %722 = vmatpush.bf16.msrb.mxu1 %v1331_v57  ;;  %v1470_v55 = vld [vmem:[%s1698_s14 + $0x6c] sm:$0xf0]  ;;  %v1431_v56 = vor.u32 %v1487_v47, %v1430_v46  ;;  %v1435_v57 = vor.u32 %v1479_v50, %v1432_v51  ;;  %v1360_v59 = vld [vmem:[%s1698_s14 + $0x70] sm:$0xf0]  ;;  %v1366_v60 = vld [vmem:[%s1698_s14 + $0x38] sm:$0xf] }
  0x5c   : > { %v1471_v61 = vld [vmem:[%s1698_s14 + $0x74] sm:$0xf0]  ;;  %v1463_v62 = vld [vmem:[%s1698_s14 + $0x3c] sm:$0xf]  ;;  %v1359_v0 = vor.u32 %v1470_v55, %v1358_v54  ;;  %v876_v20 = vld [vmem:[%s1920_s3 + $0x10] sm:$0xff]  ;;  %s1307_s15 = sshll.u32 %s1928_s24, 3 }
  0x5d   : > { %735 = vmatpush.bf16.msrb.mxu2 %v1335_v5  ;;  %748 = vmatpush.bf16.msrb.mxu3 %v1339_v6  ;;  %v1368_v63 = vld [vmem:[%s1698_s14 + $0x78] sm:$0xf0]  ;;  %v878_v30 = vld [vmem:[%s1920_s3 + $0x20] sm:$0xff]  ;;  %v879_v31 = vld [vmem:[%s1920_s3 + $0x28] sm:$0xff]  ;;  %s348_s20 = scalar_lea.vmem %s1923_s6, %s1307_s15  ;;  %vm1239_vm3 = vcmask 48128  }
  0x5e   : > { %v1371_v3 = vor.u32 %v1463_v62, %v1368_v63  ;;  %v877_v21 = vld [vmem:[%s1920_s3 + $0x18] sm:$0xff]  ;;  %v880_v41 = vld [vmem:[%s1920_s3 + $0x30] sm:$0xff]  ;;  %v882_v51 = vld [vmem:[%s1920_s3 + $0x40] sm:$0xff] }
  0x5f   : > { %759 = vmatpush.bf16.msra.mxu0 %v627_v1  ;;  %772 = vmatpush.bf16.msra.mxu1 %v630_v2  ;;  %v1363_v1 = vor.u32 %v1462_v58, %v1360_v59  ;;  %v1367_v2 = vor.u32 %v1471_v61, %v1366_v60  ;;  %v881_v42 = vld [vmem:[%s1920_s3 + $0x38] sm:$0xff]  ;;  %v884_v61 = vld [vmem:[%s1920_s3 + $0x50] sm:$0xff] }
  0x60   : > { %v885_v62 = vld [vmem:[%s1920_s3 + $0x58] sm:$0xff] }
  0x61   : > { %785 = vmatpush.bf16.msra.mxu2 %v633_v11  ;;  %798 = vmatpush.bf16.msra.mxu3 %v636_v12  ;;  %v874_v11 = vld [vmem:[%s1920_s3] sm:$0xff] }
  0x62   : > { %1440 = vmatmul.msk.bf16.vlgmr.msrb.gmra.mxu0 %vm597_vm1, %v1734_v32  ;;  %1441 = vmatmul.msk.bf16.vlgmr.msrb.gmra.mxu1 %vm597_vm1, %v1734_v32 }
  0x63   : > { %760 = vmatpush.bf16.msra.mxu0 %v1407_v13  ;;  %773 = vmatpush.bf16.msra.mxu1 %v1411_v14 }
  0x64   : > { %1442 = vmatmul.msk.bf16.vlgmr.msrb.gmra.mxu2 %vm597_vm1, %v1734_v32  ;;  %1443 = vmatmul.msk.bf16.vlgmr.msrb.gmra.mxu3 %vm597_vm1, %v1734_v32 }
  0x65   : > { %786 = vmatpush.bf16.msra.mxu2 %v1415_v23  ;;  %799 = vmatpush.bf16.msra.mxu3 %v1419_v24 }
  0x67   : > { %761 = vmatpush.bf16.msra.mxu0 %v1343_v34  ;;  %774 = vmatpush.bf16.msra.mxu1 %v1347_v35 }
  0x69   : > { %787 = vmatpush.bf16.msra.mxu2 %v1351_v38  ;;  %800 = vmatpush.bf16.msra.mxu3 %v1355_v39 }
  0x6b   : > { %811 = vmatpush.bf16.msrb.mxu0 %v639_v44  ;;  %824 = vmatpush.bf16.msrb.mxu1 %v642_v45 }
  0x6d   : > { %837 = vmatpush.bf16.msrb.mxu2 %v645_v48  ;;  %850 = vmatpush.bf16.msrb.mxu3 %v648_v49 }
  0x6f   : > { %812 = vmatpush.bf16.msrb.mxu0 %v1423_v52  ;;  %825 = vmatpush.bf16.msrb.mxu1 %v1427_v53  ;;  %v883_v52 = vld [vmem:[%s1920_s3 + $0x48] sm:$0xff] }
  0x71   : > { %838 = vmatpush.bf16.msrb.mxu2 %v1431_v56  ;;  %851 = vmatpush.bf16.msrb.mxu3 %v1435_v57 }
  0x72   : > { %1444 = vmatmul.msk.bf16.vlgmr.msra.gmra.mxu0 %vm597_vm1, %v1734_v32  ;;  %1445 = vmatmul.msk.bf16.vlgmr.msra.gmra.mxu1 %vm597_vm1, %v1734_v32 }
  0x73   : > { %813 = vmatpush.bf16.msrb.mxu0 %v1359_v0  ;;  %826 = vmatpush.bf16.msrb.mxu1 %v1363_v1 }
  0x74   : > { %1446 = vmatmul.msk.bf16.vlgmr.msra.gmra.mxu2 %vm597_vm1, %v1734_v32  ;;  %1447 = vmatmul.msk.bf16.vlgmr.msra.gmra.mxu3 %vm597_vm1, %v1734_v32 }
  0x75   : > { %839 = vmatpush.bf16.msrb.mxu2 %v1367_v2  ;;  %852 = vmatpush.bf16.msrb.mxu3 %v1371_v3 }
  0x82   : > { %1448 = vmatmul.msk.bf16.vlgmr.msrb.gmra.mxu0 %vm597_vm1, %v1734_v32  ;;  %1449 = vmatmul.msk.bf16.vlgmr.msrb.gmra.mxu1 %vm597_vm1, %v1734_v32 }
  0x84   : > { %1450 = vmatmul.msk.bf16.vlgmr.msrb.gmra.mxu2 %vm597_vm1, %v1734_v32  ;;  %1451 = vmatmul.msk.bf16.vlgmr.msrb.gmra.mxu3 %vm597_vm1, %v1734_v32  ;;  %v875_v32 = vld [vmem:[%s1920_s3 + $0x8] sm:$0xff] }
  0xc3   : > { %v1828_v4 = vpop.permute.xlu0 %394 }
  0xcf   : > { %v659_v5 = vpop.f32.mrf.mxu0  ;;  %v672_v6 = vpop.f32.mrf.mxu1 }
  0xd0   : > { %v660_v7 = vadd.f32 %v659_v5, %v1828_v4  ;;  %v673_v8 = vadd.f32 %v672_v6, %v1828_v4 }
  0xd2   : > { %v858_v9 = vmax.f32 %v660_v7, 0.0  ;;  %v859_v10 = vmax.f32 %v673_v8, 0.0  ;;  %v886_v8 = vld [vmem:[%s1920_s3 + $0x60] sm:$0xff] }
  0xd4   : > { %905 = vmatpush.xpose.msra.mxu0 %v858_v9  ;;  %925 = vmatpush.xpose.msra.mxu1 %v859_v10  ;;  %v887_v9 = vld [vmem:[%s1920_s3 + $0x68] sm:$0xff] }
  0xd7   : > { %v685_v12 = vpop.f32.mrf.mxu2  ;;  %v698_v13 = vpop.f32.mrf.mxu3  ;;  %906 = vmatmul.f32.vlgmr.msra.gmra.mxu0 %v874_v11  ;;  %926 = vmatmul.f32.vlgmr.msra.gmra.mxu1 %v875_v32 }
  0xd8   : > { %v686_v14 = vadd.f32 %v685_v12, %v1828_v4  ;;  %v699_v15 = vadd.f32 %v698_v13, %v1828_v4  ;;  %v661_v16 = vpop.f32.mrf.mxu0  ;;  %v674_v17 = vpop.f32.mrf.mxu1 }
  0xd9   : > { %v888_v17 = vld [vmem:[%s1920_s3 + $0x70] sm:$0xff] }
  0xda   : > { %v860_v18 = vmax.f32 %v686_v14, 0.0  ;;  %v861_v19 = vmax.f32 %v699_v15, 0.0 }
  0xdc   : > { %945 = vmatpush.xpose.msra.mxu2 %v860_v18  ;;  %965 = vmatpush.xpose.msra.mxu3 %v861_v19  ;;  %v889_v18 = vld [vmem:[%s1920_s3 + $0x78] sm:$0xff] }
  0xdf   : > { %v687_v22 = vpop.f32.mrf.mxu2  ;;  %v700_v23 = vpop.f32.mrf.mxu3  ;;  %946 = vmatmul.f32.vlgmr.msra.gmra.mxu2 %v876_v20  ;;  %966 = vmatmul.f32.vlgmr.msra.gmra.mxu3 %v877_v21 }
  0xe0   : > { %v711_v24 = vpop.f32.mrf.mxu0  ;;  %v724_v25 = vpop.f32.mrf.mxu1 }
  0xe1   : > { %v712_v26 = vadd.f32 %v711_v24, %v1828_v4  ;;  %v725_v27 = vadd.f32 %v724_v25, %v1828_v4 }
  0xe3   : > { %v862_v28 = vmax.f32 %v712_v26, 0.0  ;;  %v863_v29 = vmax.f32 %v725_v27, 0.0  ;;  %v1210_v27 = vld [vmem:[%s1921_s4] sm:$0xff] }
  0xe5   : > { %985 = vmatpush.xpose.msrb.mxu0 %v862_v28  ;;  %1005 = vmatpush.xpose.msrb.mxu1 %v863_v29 }
  0xe7   : > { %v737_v33 = vpop.f32.mrf.mxu2  ;;  %v750_v34 = vpop.f32.mrf.mxu3 }
  0xe8   : > { %v738_v35 = vadd.f32 %v737_v33, %v1828_v4  ;;  %v751_v36 = vadd.f32 %v750_v34, %v1828_v4  ;;  %v713_v37 = vpop.f32.mrf.mxu0  ;;  %v726_v38 = vpop.f32.mrf.mxu1  ;;  %986 = vmatmul.f32.vlgmr.msrb.gmra.mxu0 %v878_v30  ;;  %1006 = vmatmul.f32.vlgmr.msrb.gmra.mxu1 %v879_v31 }
  0xea   : > { %v864_v39 = vmax.f32 %v738_v35, 0.0  ;;  %v865_v40 = vmax.f32 %v751_v36, 0.0 }
  0xec   : > { %1025 = vmatpush.xpose.msrb.mxu2 %v864_v39  ;;  %1045 = vmatpush.xpose.msrb.mxu3 %v865_v40 }
  0xef   : > { %v739_v43 = vpop.f32.mrf.mxu2  ;;  %v752_v44 = vpop.f32.mrf.mxu3  ;;  %1026 = vmatmul.f32.vlgmr.msrb.gmra.mxu2 %v880_v41  ;;  %1046 = vmatmul.f32.vlgmr.msrb.gmra.mxu3 %v881_v42 }
  0xf0   : > { %v763_v45 = vpop.f32.mrf.mxu0  ;;  %v776_v46 = vpop.f32.mrf.mxu1 }
  0xf1   : > { %v764_v47 = vadd.f32 %v763_v45, %v1828_v4  ;;  %v777_v48 = vadd.f32 %v776_v46, %v1828_v4 }
  0xf3   : > { %v866_v49 = vmax.f32 %v764_v47, 0.0  ;;  %v867_v50 = vmax.f32 %v777_v48, 0.0 }
  0xf5   : > { %1065 = vmatpush.xpose.msra.mxu0 %v866_v49  ;;  %1085 = vmatpush.xpose.msra.mxu1 %v867_v50 }
  0xf7   : > { %v789_v53 = vpop.f32.mrf.mxu2  ;;  %v802_v54 = vpop.f32.mrf.mxu3 }
  0xf8   : > { %v790_v55 = vadd.f32 %v789_v53, %v1828_v4  ;;  %v803_v56 = vadd.f32 %v802_v54, %v1828_v4  ;;  %v765_v57 = vpop.f32.mrf.mxu0  ;;  %v778_v58 = vpop.f32.mrf.mxu1  ;;  %1066 = vmatmul.f32.vlgmr.msra.gmra.mxu0 %v882_v51  ;;  %1086 = vmatmul.f32.vlgmr.msra.gmra.mxu1 %v883_v52  ;;  %v1516_v53 = vld [vmem:[%s1922_s5] ss:$0 sm:$0xff] }
  0xfa   : > { %v868_v59 = vmax.f32 %v790_v55, 0.0  ;;  %v869_v60 = vmax.f32 %v803_v56, 0.0 }
  0xfc   : > { %1105 = vmatpush.xpose.msra.mxu2 %v868_v59  ;;  %1125 = vmatpush.xpose.msra.mxu3 %v869_v60 }
  0xff   : > { %v791_v63 = vpop.f32.mrf.mxu2  ;;  %v804_v0 = vpop.f32.mrf.mxu3  ;;  %1106 = vmatmul.f32.vlgmr.msra.gmra.mxu2 %v884_v61  ;;  %1126 = vmatmul.f32.vlgmr.msra.gmra.mxu3 %v885_v62 }
 0x100   : > { %v815_v1 = vpop.f32.mrf.mxu0  ;;  %v828_v2 = vpop.f32.mrf.mxu1 }
 0x101   : > { %v816_v3 = vadd.f32 %v815_v1, %v1828_v4  ;;  %v829_v5 = vadd.f32 %v828_v2, %v1828_v4 }
 0x103   : > { %v870_v6 = vmax.f32 %v816_v3, 0.0  ;;  %v871_v7 = vmax.f32 %v829_v5, 0.0 }
 0x105   : > { %1145 = vmatpush.xpose.msrb.mxu0 %v870_v6  ;;  %1165 = vmatpush.xpose.msrb.mxu1 %v871_v7 }
 0x107   : > { %v841_v10 = vpop.f32.mrf.mxu2  ;;  %v854_v11 = vpop.f32.mrf.mxu3 }
 0x108   : > { %v842_v32 = vadd.f32 %v841_v10, %v1828_v4  ;;  %v855_v12 = vadd.f32 %v854_v11, %v1828_v4  ;;  %v817_v13 = vpop.f32.mrf.mxu0  ;;  %v830_v14 = vpop.f32.mrf.mxu1  ;;  %1146 = vmatmul.f32.vlgmr.msrb.gmra.mxu0 %v886_v8  ;;  %1166 = vmatmul.f32.vlgmr.msrb.gmra.mxu1 %v887_v9 }
 0x109   : > { %1234 = vmatpush.msra.mxu0 %v1210_v27 }
 0x10a   : > { %v872_v15 = vmax.f32 %v842_v32, 0.0  ;;  %v873_v16 = vmax.f32 %v855_v12, 0.0 }
 0x10c   : > { %1185 = vmatpush.xpose.msrb.mxu2 %v872_v15  ;;  %1205 = vmatpush.xpose.msrb.mxu3 %v873_v16 }
 0x10f   : > { %v843_v19 = vpop.f32.mrf.mxu2  ;;  %v856_v20 = vpop.f32.mrf.mxu3  ;;  %1186 = vmatmul.f32.vlgmr.msrb.gmra.mxu2 %v888_v17  ;;  %1206 = vmatmul.f32.vlgmr.msrb.gmra.mxu3 %v889_v18 }
 0x154   : > { %v927_v4 = vpop.f32.mrf.mxu1  ;;  %v907_v21 = vpop.f32.mrf.mxu0 }
 0x155   : > { %v928_v22 = vadd.f32 %v927_v4, %v907_v21 }
 0x162   : > { %v947_v23 = vpop.f32.mrf.mxu2  ;;  %v967_v25 = vpop.f32.mrf.mxu3 }
 0x163   : > { %v948_v24 = vadd.f32 %v947_v23, %v928_v22 }
 0x165   : > { %v968_v26 = vadd.f32 %v967_v25, %v948_v24  ;;  %v987_v28 = vpop.f32.mrf.mxu0  ;;  %v1007_v30 = vpop.f32.mrf.mxu1 }
 0x167   : > { %v988_v29 = vadd.f32 %v987_v28, %v968_v26 }
 0x169   : > { %v1008_v31 = vadd.f32 %v1007_v30, %v988_v29 }
 0x172   : > { %v1027_v33 = vpop.f32.mrf.mxu2  ;;  %v1047_v35 = vpop.f32.mrf.mxu3 }
 0x173   : > { %v1028_v34 = vadd.f32 %v1027_v33, %v1008_v31 }
 0x175   : > { %v1048_v36 = vadd.f32 %v1047_v35, %v1028_v34  ;;  %v1067_v37 = vpop.f32.mrf.mxu0  ;;  %v1087_v39 = vpop.f32.mrf.mxu1 }
 0x177   : > { %v1068_v38 = vadd.f32 %v1067_v37, %v1048_v36 }
 0x179   : > { %v1088_v40 = vadd.f32 %v1087_v39, %v1068_v38 }
 0x182   : > { %v1107_v41 = vpop.f32.mrf.mxu2  ;;  %v1127_v43 = vpop.f32.mrf.mxu3 }
 0x183   : > { %v1108_v42 = vadd.f32 %v1107_v41, %v1088_v40 }
 0x185   : > { %v1128_v44 = vadd.f32 %v1127_v43, %v1108_v42  ;;  %v1147_v45 = vpop.f32.mrf.mxu0  ;;  %v1167_v47 = vpop.f32.mrf.mxu1 }
 0x187   : > { %v1148_v46 = vadd.f32 %v1147_v45, %v1128_v44 }
 0x189   : > { %v1168_v48 = vadd.f32 %v1167_v47, %v1148_v46 }
 0x192   : > { %v1187_v49 = vpop.f32.mrf.mxu2  ;;  %v1207_v50 = vpop.f32.mrf.mxu3 }
 0x193   : > { %v1188_v51 = vadd.f32 %v1187_v49, %v1168_v48 }
 0x195   : > { %v1208_v52 = vadd.f32 %v1207_v50, %v1188_v51 }
 0x197   : > { %1452 = vmatmul.msk.f32.vlgmr.msra.gmra.mxu0 %vm1215_vm2, %v1208_v52 }
 0x214   : > { %v1236_v54 = vpop.f32.mrf.mxu0 }
 0x215   : > { %v1237_v55 = vadd.f32 %v1516_v53, %v1236_v54 }
 0x217   : > { %1240 = vst.msk [vmem:[%s348_s20] sm:$0xff] %vm1239_vm3, %v1237_v55 }
 0x218 PF: > { %p13_p9 = scmp.ge.s32.totalorder %s1594_s25, 4   ;;  %s1924_s21 = smov %s1535_s22 }
 0x219   : > { %s1925_s22 = smov %s1603_s28  ;;  %s1926_s23 = smov %s1594_s25 }
 0x21a   :  { %15 = sbr.rel (!%p13_p9) target bundleno = 2 (0x2), region = 102 }

</bundles_post_ra>
